<compile_context>
chip_gen: v7x
topology: tpu7x:2x2x1
jax: 0.10.0
libtpu: 0.0.40
codegen_flags: <defaults>
</compile_context>

<pallas_src>
import jax
import jax.numpy as jnp
from jax import lax
from jax.experimental import pallas as pl
from jax.experimental.pallas import tpu as pltpu


def _round_up(v, m):
    return (v + m - 1) // m * m


def _pad2(a, rows, cols):
    return jnp.pad(a, ((0, rows - a.shape[0]), (0, cols - a.shape[1])))


# ---------------------------------------------------------------------------
# Kernel A: per-node projections (linear_in + fused projections + pos layer 1)
# ---------------------------------------------------------------------------
def node_projection_kernel(x_ref, pos_ref, w_in_ref, b_in_ref, w_cat_ref, pw1_ref,
                           xlin_ref, s_ref, d_ref, p_ref):
    f32 = jnp.float32
    mx = w_in_ref.dtype
    # linear_in + ReLU (bf16 MXU operands, f32 accumulation)
    h = jnp.dot(x_ref[...].astype(mx), w_in_ref[...], preferred_element_type=f32) + b_in_ref[...]
    h = jnp.maximum(h, 0.0)
    # fused node projections: [ lin(x) | h @ (w_src@aw1) | h @ (w_dst@aw1) ]  (single MXU matmul)
    proj = jnp.dot(h.astype(mx), w_cat_ref[...], preferred_element_type=f32)
    cw = xlin_ref.shape[1]
    hw = s_ref.shape[1]
    xlin_ref[...] = proj[:, :cw]                       # slices at 128-lane boundaries (free)
    s_ref[...] = proj[:, cw:cw + hw]
    d_ref[...] = proj[:, cw + hw:cw + 2 * hw]
    # pos_nn first (bias-free before ReLU) layer hoisted to per-node: p = pos @ pw1
    p_ref[...] = jnp.dot(pos_ref[...], pw1_ref[...], preferred_element_type=f32)


# ---------------------------------------------------------------------------
# Kernel B: pairwise attention; grid = (dst tiles, src tiles), online softmax
# over source tiles; source axis in lanes, real channels/hidden in sublanes.
# ---------------------------------------------------------------------------
def pairwise_attention_kernel(pdst_ref, psrct_ref, ddst_ref, ssrct_ref, xlint_ref, adj_ref,
                              pw2t_ref, pb2_ref, aw1t_ref, aw2t_ref, ab2_ref,
                              w_out_ref, b_out_ref, o_ref, m_scr, l_scr, acc_scr):
    f32 = jnp.float32
    ew = pdst_ref.dtype          # elementwise dtype (bf16 on v6e/v7x, f32 on v5e)
    mx = pw2t_ref.dtype          # MXU operand dtype (bf16 on all generations)
    tm = pdst_ref.shape[0]
    j = pl.program_id(1)

    @pl.when(j == 0)
    def _init():
        m_scr[...] = jnp.full_like(m_scr, -1e30)
        l_scr[...] = jnp.zeros_like(l_scr)
        acc_scr[...] = jnp.zeros_like(acc_scr)

    def bmm(w2d, x3d):
        # batched-over-tm matmul:  [tm, M, K] x [tm, K, tn] -> [tm, M, tn]   (f32 accumulation)
        wb = jnp.broadcast_to(w2d, (tm,) + w2d.shape)
        return lax.dot_general(wb, x3d, (((2,), (1,)), ((0,), (0,))),
                               preferred_element_type=f32)

    # pos_nn layer 1: (pos_i - pos_j)@pw1 + pb1 == (p_i + pb1) - p_j   (bias pre-folded into pdst)
    t = jnp.maximum(pdst_ref[...][:, :, None] - psrct_ref[...][None, :, :], 0)          # [tm,H,tn]

    # pos_nn layer 2
    delta = jnp.maximum(bmm(pw2t_ref[...], t.astype(mx)) + pb2_ref[...][None, :, :],
                        0).astype(ew)                                                    # [tm,C,tn]

    # attention MLP layer 1 (lin_src/lin_dst folded into d/s; ab1 pre-folded into ddst)
    da = bmm(aw1t_ref[...], delta.astype(mx)).astype(ew)                                 # [tm,H,tn]
    t2 = jnp.maximum(da + ddst_ref[...][:, :, None] - ssrct_ref[...][None, :, :], 0)

    # attention MLP layer 2
    alpha = jnp.maximum(bmm(aw2t_ref[...], t2.astype(mx)) + ab2_ref[...][None, :, :],
                        0).astype(ew)                                                    # [tm,C,tn]

    # masked ONLINE softmax over the source (lane) axis, fused with the weighted aggregation
    mask = (adj_ref[...] > 0)[:, None, :]                     # [tm,1,tn] bool (no int8->f32 cast)
    logits = jnp.where(mask, alpha, -1e30)
    m_old = m_scr[...]                                        # f32 [tm,C]
    m_new = jnp.maximum(m_old, jnp.max(logits, axis=-1).astype(f32))
    rescale = jnp.exp(m_old - m_new)                          # f32 [tm,C]
    e = jnp.exp(logits - m_new.astype(ew)[:, :, None])
    e = jnp.where(mask, e, 0.0)                               # fully-masked src tiles add exactly 0
    contrib = e * (xlint_ref[...][None, :, :] + delta)        # [tm,C,tn]
    l_scr[...] = l_scr[...] * rescale + jnp.sum(e.astype(f32), axis=-1)
    acc_scr[...] = acc_scr[...] * rescale + jnp.sum(contrib.astype(f32), axis=-1)
    m_scr[...] = m_new

    @pl.when(j == pl.num_programs(1) - 1)
    def _finalize():
        # exact divide: the [tm, C] normalization is tiny, so skip the approx reciprocal
        agg = acc_scr[...] / l_scr[...]
        # linear_out + ReLU (lane-dense [tm, 128] store)
        y = jnp.dot(agg.astype(mx), w_out_ref[...], preferred_element_type=f32) + b_out_ref[...]
        o_ref[...] = jnp.maximum(y, 0.0)


# ---------------------------------------------------------------------------
# Wrapper
# ---------------------------------------------------------------------------
def _device_kind():
    try:
        return jax.devices()[0].device_kind.lower()
    except Exception:
        return ""


def transformer_block(x, pos, adj, params, *, tm=64, tn=128):
    n, c_in = x.shape
    c_out = params["w_lin"].shape[1]
    hidden = params["pos_w1"].shape[1]
    csub = _round_up(c_out, 8)     # real channels live in SUBLANES inside kernel B
    hsub = _round_up(hidden, 8)
    cpad = _round_up(c_out, 128)   # lane-dense widths for kernel A outputs / final store
    hpad = _round_up(hidden, 128)

    tm = min(tm, n)
    tn = min(tn, n)
    assert n % 128 == 0, "node count must be a multiple of 128"
    assert n % tm == 0 and tm % 32 == 0, "tm must divide N and be a multiple of 32 (int8 adj tile)"
    assert n % tn == 0 and tn % 128 == 0, "tn must divide N and be a multiple of 128"

    kind = _device_kind()
    old_gen = any(g in kind for g in ("v2", "v3", "v4", "v5"))
    f32 = jnp.float32
    mx = jnp.bfloat16                      # MXU operand dtype (bf16-native on every generation)
    ew = f32 if old_gen else jnp.bfloat16  # bf16 VPU/EUP elementwise only on v6e/v7x

    # per-generation VMEM budget (v7x: 64 MiB physical, v5e/v6e: 128 MiB); our per-step need is
    # only a few MiB thanks to the source-axis tiling, but keep an explicit, safe cap.
    try:
        vmem_cap = int(pltpu.get_tpu_info().vmem_capacity_bytes)
    except Exception:
        vmem_cap = 64 * 1024 * 1024 if "v7" in kind else 128 * 1024 * 1024
    vmem_limit = max(min(vmem_cap * 3 // 4, 112 * 1024 * 1024), 32 * 1024 * 1024)

    # fold lin_src / lin_dst through attention MLP layer 1 and fuse the node projections
    w_src_f = params["w_src"] @ params["attn_w1"]            # [Cin, H]
    w_dst_f = params["w_dst"] @ params["attn_w1"]            # [Cin, H]
    w_cat = jnp.concatenate(
        [_pad2(params["w_lin"], c_in, cpad),
         _pad2(w_src_f, c_in, hpad),
         _pad2(w_dst_f, c_in, hpad)], axis=1).astype(mx)     # [Cin, cpad + 2*hpad]
    w_in_b = params["w_in"].astype(mx)
    b_in = params["b_in"].astype(f32)
    pw1_p = _pad2(params["pos_w1"], 3, hpad).astype(f32)

    # ---- kernel A: per-node projections, gridded over node tiles ----
    ta = 256 if n % 256 == 0 else 128
    xlin_p, s_p, d_p, p_p = pl.pallas_call(
        node_projection_kernel,
        out_shape=(jax.ShapeDtypeStruct((n, cpad), f32),
                   jax.ShapeDtypeStruct((n, hpad), f32),
                   jax.ShapeDtypeStruct((n, hpad), f32),
                   jax.ShapeDtypeStruct((n, hpad), f32)),
        grid=(n // ta,),
        in_specs=[
            pl.BlockSpec((ta, c_in), lambda i: (i, 0)),
            pl.BlockSpec((ta, pos.shape[1]), lambda i: (i, 0)),
            pl.BlockSpec(w_in_b.shape, lambda i: (0, 0)),
            pl.BlockSpec(b_in.shape, lambda i: (0, 0)),
            pl.BlockSpec(w_cat.shape, lambda i: (0, 0)),
            pl.BlockSpec(pw1_p.shape, lambda i: (0, 0)),
        ],
        out_specs=(pl.BlockSpec((ta, cpad), lambda i: (i, 0)),
                   pl.BlockSpec((ta, hpad), lambda i: (i, 0)),
                   pl.BlockSpec((ta, hpad), lambda i: (i, 0)),
                   pl.BlockSpec((ta, hpad), lambda i: (i, 0))),
        compiler_params=pltpu.CompilerParams(
            dimension_semantics=("parallel",),
            vmem_limit_bytes=vmem_limit),
    )(x, pos, w_in_b, b_in, w_cat, pw1_p)

    # ---- tiny XLA re-layout: narrow to real widths, fold dst-side biases, transpose src side ----
    pb1 = _pad2(params["pos_b1"], 1, hsub)
    ab1 = _pad2(params["attn_b1"], 1, hsub)
    p_n = p_p[:, :hsub]
    pdst_b = (p_n + pb1).astype(ew)                 # [N, H]  destination side, pos bias folded
    ddst_b = (d_p[:, :hsub] + ab1).astype(ew)       # [N, H]  destination side, attn bias folded
    psrct = p_n.T.astype(ew)                        # [H, N]  source side: sources in lanes
    ssrct = s_p[:, :hsub].T.astype(ew)              # [H, N]
    xlint = xlin_p[:, :csub].T.astype(ew)           # [C, N]

    pw2t = _pad2(params["pos_w2"], hsub, csub).T.astype(mx)    # [C, H]
    pb2c = _pad2(params["pos_b2"], 1, csub).T.astype(f32)      # [C, 1]
    aw1t = _pad2(params["attn_w1"], csub, hsub).T.astype(mx)   # [H, C]
    aw2t = _pad2(params["attn_w2"], hsub, csub).T.astype(mx)   # [C, H]
    ab2c = _pad2(params["attn_b2"], 1, csub).T.astype(f32)     # [C, 1]
    w_out_p = _pad2(params["w_out"], csub, cpad).astype(mx)    # [C, cpad]
    b_out_p = _pad2(params["b_out"], 1, cpad).astype(f32)      # [1, cpad]

    adj_i8 = adj.astype(jnp.int8)

    # ---- kernel B: pairwise attention with online softmax over source tiles ----
    def dst_spec(shape):
        return pl.BlockSpec(shape, lambda i, j: (i, 0))

    def src_spec(shape):
        return pl.BlockSpec(shape, lambda i, j: (0, j))

    def cst_spec(shape):
        return pl.BlockSpec(shape, lambda i, j: (0, 0))

    out_pad = pl.pallas_call(
        pairwise_attention_kernel,
        out_shape=jax.ShapeDtypeStruct((n, cpad), f32),
        grid=(n // tm, n // tn),
        in_specs=[
            dst_spec((tm, hsub)),                        # p_i + pb1 (destination tile)
            src_spec((hsub, tn)),                        # p_j  (source tile, sources in lanes)
            dst_spec((tm, hsub)),                        # d_i + ab1
            src_spec((hsub, tn)),                        # s_j
            src_spec((csub, tn)),                        # lin(x)_j
            pl.BlockSpec((tm, tn), lambda i, j: (i, j)),  # int8 adjacency tile
            cst_spec(pw2t.shape), cst_spec(pb2c.shape),
            cst_spec(aw1t.shape), cst_spec(aw2t.shape), cst_spec(ab2c.shape),
            cst_spec(w_out_p.shape), cst_spec(b_out_p.shape),
        ],
        out_specs=pl.BlockSpec((tm, cpad), lambda i, j: (i, 0)),
        scratch_shapes=[pltpu.VMEM((tm, csub), f32)] * 3,   # running max / denom / weighted sum
        compiler_params=pltpu.CompilerParams(
            dimension_semantics=("parallel", "arbitrary"),   # dst tiles megacore-sharded, src last
            vmem_limit_bytes=vmem_limit),
    )(pdst_b, psrct, ddst_b, ssrct, xlint, adj_i8,
      pw2t, pb2c, aw1t, aw2t, ab2c, w_out_p, b_out_p)

    return out_pad[:, :c_out]


# ---------------------------------------------------------------------------
# Parameters / graph helpers / pure-JAX reference
# ---------------------------------------------------------------------------
def make_params(key, c_in, c_out, hidden=64):
    ks = jax.random.split(key, 16)
    f32 = jnp.float32

    def w(k, shape, scale=0.1):
        return (scale * jax.random.normal(k, shape)).astype(f32)

    return {
        # linear_in: [Cin -> Cin]
        "w_in": w(ks[0], (c_in, c_in)), "b_in": w(ks[1], (1, c_in)),
        # PointTransformerConv bias-free projections [Cin -> Cout]
        "w_lin": w(ks[2], (c_in, c_out)),
        "w_src": w(ks[3], (c_in, c_out)),
        "w_dst": w(ks[4], (c_in, c_out)),
        # positional_nn: MLP([3, 64, Cout]) without batch norm (ReLU after every Linear)
        "pos_w1": w(ks[5], (3, hidden)), "pos_b1": w(ks[6], (1, hidden)),
        "pos_w2": w(ks[7], (hidden, c_out)), "pos_b2": w(ks[8], (1, c_out)),
        # attention_nn: MLP([Cout, 64, Cout]) without batch norm
        "attn_w1": w(ks[9], (c_out, hidden)), "attn_b1": w(ks[10], (1, hidden)),
        "attn_w2": w(ks[11], (hidden, c_out)), "attn_b2": w(ks[12], (1, c_out)),
        # linear_out: [Cout -> Cout]
        "w_out": w(ks[13], (c_out, c_out)), "b_out": w(ks[14], (1, c_out)),
    }


def edge_index_to_adj(edge_index, n):
    # adj[i, j] = 1 iff edge j -> i (edge_index[0]=src j, edge_index[1]=dst i); int8 mask.
    # remove_self_loops + add_self_loops -> exactly one self loop per node; the guaranteed
    # self loop is what makes the -1e30 softmax masking in kernel B well defined per row.
    adj = jnp.zeros((n, n), jnp.int8).at[edge_index[1], edge_index[0]].set(1)
    diag = jnp.arange(n)
    adj = adj.at[diag, diag].set(1)
    return adj


def reference(x, pos, adj, params):
    h = jnp.maximum(x @ params["w_in"] + params["b_in"], 0.0)
    x_lin = h @ params["w_lin"]
    a_src = h @ params["w_src"]
    a_dst = h @ params["w_dst"]
    pd = pos[:, None, :] - pos[None, :, :]
    t = jnp.maximum(pd @ params["pos_w1"] + params["pos_b1"], 0.0)
    delta = jnp.maximum(t @ params["pos_w2"] + params["pos_b2"], 0.0)
    a = a_dst[:, None, :] - a_src[None, :, :] + delta
    t2 = jnp.maximum(a @ params["attn_w1"] + params["attn_b1"], 0.0)
    alpha = jnp.maximum(t2 @ params["attn_w2"] + params["attn_b2"], 0.0)
    mask = (adj > 0)[:, :, None]
    w = jax.nn.softmax(jnp.where(mask, alpha, -jnp.inf), axis=1)
    out = jnp.sum(w * (x_lin[None, :, :] + delta), axis=1)
    return jnp.maximum(out @ params["w_out"] + params["b_out"], 0.0)


if __name__ == "__main__":
    key = jax.random.PRNGKey(0)
    k_x, k_pos, k_par = jax.random.split(key, 3)

    N = 128        # number of points / nodes
    C_IN = 16      # in_channels
    C_OUT = 16     # out_channels
    HIDDEN = 64    # MLP hidden width

    x = jax.random.normal(k_x, (N, C_IN), dtype=jnp.float32)
    pos = jax.random.normal(k_pos, (N, 3), dtype=jnp.float32)

    # bidirectional ring graph as edge_index [2, E]
    idx = jnp.arange(N)
    src = jnp.concatenate([idx, (idx + 1) % N])
    dst = jnp.concatenate([(idx + 1) % N, idx])
    edge_index = jnp.stack([src, dst], axis=0)          # [2, 256]
    adj = edge_index_to_adj(edge_index, N)              # int8 [N, N]

    params = make_params(k_par, C_IN, C_OUT, HIDDEN)

    out = transformer_block(x, pos, adj, params)
    out = jax.block_until_ready(out)
    assert out.shape == (N, C_OUT)
    assert bool(jnp.all(jnp.isfinite(out)))

    with jax.default_matmul_precision("float32"):
        ref = reference(x, pos, adj, params)
    err = float(jnp.max(jnp.abs(out - ref)))
    assert err < 1e-2, f"max abs err {err}"
    print("KERNEL_OK")
</pallas_src>

<mosaic_0001>
module attributes {stable_mosaic.version = 11 : i64} {
  func.func @node_projection_kernel(%arg0: i32, %arg1: memref<128x16xf32, #tpu.memory_space<vmem>>, %arg2: memref<128x3xf32, #tpu.memory_space<vmem>>, %arg3: memref<16x16xbf16, #tpu.memory_space<vmem>>, %arg4: memref<1x16xf32, #tpu.memory_space<vmem>>, %arg5: memref<16x384xbf16, #tpu.memory_space<vmem>>, %arg6: memref<3x128xf32, #tpu.memory_space<vmem>>, %arg7: memref<128x128xf32, #tpu.memory_space<vmem>>, %arg8: memref<128x128xf32, #tpu.memory_space<vmem>>, %arg9: memref<128x128xf32, #tpu.memory_space<vmem>>, %arg10: memref<128x128xf32, #tpu.memory_space<vmem>>) attributes {dimension_semantics = [#tpu.dimension_semantics<parallel>], iteration_bounds = array<i64: 1>, scalar_prefetch = 0 : i64, scratch_operands = 0 : i64, tpu.core_type = #tpu.core_type<tc>, window_params = [{transform_indices = @transform_0, window_bounds = array<i64: 128, 16>}, {transform_indices = @transform_1, window_bounds = array<i64: 128, 3>}, {pipeline_mode = #tpu.pipeline_mode<synchronous>, transform_indices = @transform_2, window_bounds = array<i64: 16, 16>}, {pipeline_mode = #tpu.pipeline_mode<synchronous>, transform_indices = @transform_3, window_bounds = array<i64: 1, 16>}, {pipeline_mode = #tpu.pipeline_mode<synchronous>, transform_indices = @transform_4, window_bounds = array<i64: 16, 384>}, {pipeline_mode = #tpu.pipeline_mode<synchronous>, transform_indices = @transform_5, window_bounds = array<i64: 3, 128>}, {transform_indices = @transform_6, window_bounds = array<i64: 128, 128>}, {transform_indices = @transform_7, window_bounds = array<i64: 128, 128>}, {transform_indices = @transform_8, window_bounds = array<i64: 128, 128>}, {transform_indices = @transform_9, window_bounds = array<i64: 128, 128>}]} {
    %c0 = arith.constant 0 : index
    %c0_0 = arith.constant 0 : index
    %0 = vector.load %arg1[%c0, %c0_0] : memref<128x16xf32, #tpu.memory_space<vmem>>, vector<128x16xf32>
    %1 = arith.truncf %0 : vector<128x16xf32> to vector<128x16xbf16>
    %c0_1 = arith.constant 0 : index
    %c0_2 = arith.constant 0 : index
    %2 = vector.load %arg3[%c0_1, %c0_2] : memref<16x16xbf16, #tpu.memory_space<vmem>>, vector<16x16xbf16>
    %cst = arith.constant dense<0.000000e+00> : vector<128x16xf32>
    %3 = tpu.matmul %1, %2, %cst {dimension_numbers = #tpu.dot_dimension_numbers<[1], [0], [0], [1], [0, 0, 1, 1], [], []>} : vector<128x16xbf16>, vector<16x16xbf16>, vector<128x16xf32> -> vector<128x16xf32>
    %c0_3 = arith.constant 0 : index
    %c0_4 = arith.constant 0 : index
    %4 = vector.load %arg4[%c0_3, %c0_4] : memref<1x16xf32, #tpu.memory_space<vmem>>, vector<1x16xf32>
    %5 = vector.broadcast %4 : vector<1x16xf32> to vector<128x16xf32>
    %6 = arith.addf %3, %5 : vector<128x16xf32>
    %cst_5 = arith.constant 0.000000e+00 : f32
    %7 = vector.broadcast %cst_5 : f32 to vector<128x16xf32>
    %8 = arith.maximumf %6, %7 : vector<128x16xf32>
    %9 = arith.truncf %8 : vector<128x16xf32> to vector<128x16xbf16>
    %c0_6 = arith.constant 0 : index
    %c0_7 = arith.constant 0 : index
    %10 = vector.load %arg5[%c0_6, %c0_7] : memref<16x384xbf16, #tpu.memory_space<vmem>>, vector<16x384xbf16>
    %cst_8 = arith.constant dense<0.000000e+00> : vector<128x384xf32>
    %11 = tpu.matmul %9, %10, %cst_8 {dimension_numbers = #tpu.dot_dimension_numbers<[1], [0], [0], [1], [0, 0, 1, 1], [], []>} : vector<128x16xbf16>, vector<16x384xbf16>, vector<128x384xf32> -> vector<128x384xf32>
    %12 = vector.extract_strided_slice %11 {offsets = [0, 0], sizes = [128, 128], strides = [1, 1]} : vector<128x384xf32> to vector<128x128xf32>
    %c0_9 = arith.constant 0 : index
    %c0_10 = arith.constant 0 : index
    %13 = vector.load %arg7[%c0_9, %c0_10] : memref<128x128xf32, #tpu.memory_space<vmem>>, vector<128x128xf32>
    tpu.vector_store %arg7[%c0_9, %c0_10], %12 {strides = array<i32>} : memref<128x128xf32, #tpu.memory_space<vmem>>, vector<128x128xf32>,
    %14 = vector.extract_strided_slice %11 {offsets = [0, 128], sizes = [128, 128], strides = [1, 1]} : vector<128x384xf32> to vector<128x128xf32>
    %c0_11 = arith.constant 0 : index
    %c0_12 = arith.constant 0 : index
    %15 = vector.load %arg8[%c0_11, %c0_12] : memref<128x128xf32, #tpu.memory_space<vmem>>, vector<128x128xf32>
    tpu.vector_store %arg8[%c0_11, %c0_12], %14 {strides = array<i32>} : memref<128x128xf32, #tpu.memory_space<vmem>>, vector<128x128xf32>,
    %16 = vector.extract_strided_slice %11 {offsets = [0, 256], sizes = [128, 128], strides = [1, 1]} : vector<128x384xf32> to vector<128x128xf32>
    %c0_13 = arith.constant 0 : index
    %c0_14 = arith.constant 0 : index
    %17 = vector.load %arg9[%c0_13, %c0_14] : memref<128x128xf32, #tpu.memory_space<vmem>>, vector<128x128xf32>
    tpu.vector_store %arg9[%c0_13, %c0_14], %16 {strides = array<i32>} : memref<128x128xf32, #tpu.memory_space<vmem>>, vector<128x128xf32>,
    %c0_15 = arith.constant 0 : index
    %c0_16 = arith.constant 0 : index
    %18 = vector.load %arg2[%c0_15, %c0_16] : memref<128x3xf32, #tpu.memory_space<vmem>>, vector<128x3xf32>
    %c0_17 = arith.constant 0 : index
    %c0_18 = arith.constant 0 : index
    %19 = vector.load %arg6[%c0_17, %c0_18] : memref<3x128xf32, #tpu.memory_space<vmem>>, vector<3x128xf32>
    %cst_19 = arith.constant dense<0.000000e+00> : vector<128x128xf32>
    %20 = tpu.matmul %18, %19, %cst_19 {dimension_numbers = #tpu.dot_dimension_numbers<[1], [0], [0], [1], [0, 0, 1, 1], [], []>} : vector<128x3xf32>, vector<3x128xf32>, vector<128x128xf32> -> vector<128x128xf32>
    %c0_20 = arith.constant 0 : index
    %c0_21 = arith.constant 0 : index
    %21 = vector.load %arg10[%c0_20, %c0_21] : memref<128x128xf32, #tpu.memory_space<vmem>>, vector<128x128xf32>
    tpu.vector_store %arg10[%c0_20, %c0_21], %20 {strides = array<i32>} : memref<128x128xf32, #tpu.memory_space<vmem>>, vector<128x128xf32>,
    return
  }
  func.func @transform_0(%arg0: i32) -> (i32, i32) {
    %c0_i32 = arith.constant 0 : i32
    %c0_i32_0 = arith.constant 0 : i32
    return %arg0, %c0_i32 : i32, i32
  }
  func.func @transform_1(%arg0: i32) -> (i32, i32) {
    %c0_i32 = arith.constant 0 : i32
    %c0_i32_0 = arith.constant 0 : i32
    return %arg0, %c0_i32 : i32, i32
  }
  func.func @transform_2(%arg0: i32) -> (i32, i32) {
    %c0_i32 = arith.constant 0 : i32
    %c0_i32_0 = arith.constant 0 : i32
    %c0_i32_1 = arith.constant 0 : i32
    return %c0_i32, %c0_i32_0 : i32, i32
  }
  func.func @transform_3(%arg0: i32) -> (i32, i32) {
    %c0_i32 = arith.constant 0 : i32
    %c0_i32_0 = arith.constant 0 : i32
    %c0_i32_1 = arith.constant 0 : i32
    return %c0_i32, %c0_i32_0 : i32, i32
  }
  func.func @transform_4(%arg0: i32) -> (i32, i32) {
    %c0_i32 = arith.constant 0 : i32
    %c0_i32_0 = arith.constant 0 : i32
    %c0_i32_1 = arith.constant 0 : i32
    return %c0_i32, %c0_i32_0 : i32, i32
  }
  func.func @transform_5(%arg0: i32) -> (i32, i32) {
    %c0_i32 = arith.constant 0 : i32
    %c0_i32_0 = arith.constant 0 : i32
    %c0_i32_1 = arith.constant 0 : i32
    return %c0_i32, %c0_i32_0 : i32, i32
  }
  func.func @transform_6(%arg0: i32) -> (i32, i32) {
    %c0_i32 = arith.constant 0 : i32
    %c0_i32_0 = arith.constant 0 : i32
    return %arg0, %c0_i32 : i32, i32
  }
  func.func @transform_7(%arg0: i32) -> (i32, i32) {
    %c0_i32 = arith.constant 0 : i32
    %c0_i32_0 = arith.constant 0 : i32
    return %arg0, %c0_i32 : i32, i32
  }
  func.func @transform_8(%arg0: i32) -> (i32, i32) {
    %c0_i32 = arith.constant 0 : i32
    %c0_i32_0 = arith.constant 0 : i32
    return %arg0, %c0_i32 : i32, i32
  }
  func.func @transform_9(%arg0: i32) -> (i32, i32) {
    %c0_i32 = arith.constant 0 : i32
    %c0_i32_0 = arith.constant 0 : i32
    return %arg0, %c0_i32 : i32, i32
  }
}

</mosaic_0001>

<bundles_post_ra>
// kernel: tpu_custom_call.1
= control target key start
LH: loop header
LB: loop body
LE: loop exit
PB: predicated region body
PF: predicated region fallthrough
CT: control target
= control target key end

     0   :  { %15 = vsyncpa [#allocation3], 0  ;;  %s1586_s0 = inlined_call_operand.hbm [shape: f32[128,16], index: 0, kind: input, shape index: {}]   ;;  %s1587_s1 = inlined_call_operand.hbm [shape: f32[128,3], index: 1, kind: input, shape index: {}]   ;;  %s1588_s2 = inlined_call_operand.hbm [shape: bf16[16,16], index: 2, kind: input, shape index: {}]   ;;  %s1589_s3 = inlined_call_operand.hbm [shape: f32[1,16], index: 3, kind: input, shape index: {}]   ;;  %s1590_s4 = inlined_call_operand.hbm [shape: bf16[16,384], index: 4, kind: input, shape index: {}]   ;;  %s1591_s5 = inlined_call_operand.hbm [shape: f32[3,128], index: 5, kind: input, shape index: {}]   ;;  %s1592_s6 = inlined_call_operand.hbm [shape: f32[128,128], index: 6, kind: output, shape index: {0}]   ;;  %s1593_s7 = inlined_call_operand.hbm [shape: f32[128,128], index: 7, kind: output, shape index: {1}]   ;;  %s1594_s8 = inlined_call_operand.hbm [shape: f32[128,128], index: 8, kind: output, shape index: {2}]   ;;  %s1595_s9 = inlined_call_operand.hbm [shape: f32[128,128], index: 9, kind: output, shape index: {3}]  }
   0x1   :  { %16 = vsyncpa [#allocation6], 0 }
   0x2   :  { %17 = vsyncpa [#allocation9], 0 }
   0x3   :  { %18 = vsyncpa [#allocation12], 0 }
   0x4   :  { %19 = vsyncpa [#allocation4], 0 }
   0x5   :  { %20 = vsyncpa [#allocation15], 0 }
   0x6   :  { %21 = vsyncpa [#allocation18], 0  ;;  %s1295_s30 = smov [#allocation5]   ;;  %s1296_s11 = smov [#allocation8]  }
   0x7   :  { %s39_s10 = sshll.u32 %s1295_s30, 4  ;;  %s64_s12 = sshll.u32 %s1296_s11, 4  ;;  %s40_s10 = int_to_ptr.vmem [resolvable:$true] %s39_s10  ;;  %s1362_s12 = int_to_ptr.vmem [resolvable:$true] %s64_s12 }
   0x8   :  { %s1061_s15 = scalar_lea.hbm %s1587_s1, 2048 }
   0x9   :  { %p1062_p0 = scmp.ne.s32.totalorder %s1587_s1, %s1061_s15  ;;  %p1065_p1 = scmp.lt.u32.totalorder %s1061_s15, %s1587_s1 }
   0xb   :  { %p1067_p2 = pnand %p1065_p1, %p1062_p0 }
   0xd   :  { %1070 = shalt.err (!%p1067_p2)
}
   0xe   :  { %s1071_s20 = scalar_lea.vmem %s40_s10, 2048  ;;  %p1076_p4 = scmp.lt.s32.totalorder %s40_s10, %s40_s10 }
   0xf   :  { %p1072_p3 = scmp.ne.s32.totalorder %s40_s10, %s1071_s20  ;;  %p1077_p5 = scmp.lt.s32.totalorder %s1071_s20, %s1071_s20 }
  0x11   :  { %p1078_p6 = por %p1077_p5, %p1076_p4 }
  0x13   :  { %p1079_p7 = pnand %p1078_p6, %p1072_p3 }
  0x15   :  { %1082 = shalt.err (!%p1079_p7)
}
  0x16   :  { %s1297_s21 = smov 128   ;;  %s1298_s22 = smov 8  }
  0x17   :  { %45 = dma.hbm_to_vmem [thread:$0]  %s1587_s1, 2048, %s40_s10, [#allocation6], %s1297_s21, %s1297_s21, %s1298_s22  }
  0x18   :  { %s1083_s27 = scalar_lea.hbm %s1589_s3, 16 }
  0x19   :  { %p1084_p8 = scmp.ne.s32.totalorder %s1589_s3, %s1083_s27  ;;  %p1087_p9 = scmp.lt.u32.totalorder %s1083_s27, %s1589_s3 }
  0x1b   :  { %p1089_p10 = pnand %p1087_p9, %p1084_p8 }
  0x1d   :  { %1092 = shalt.err (!%p1089_p10)
}
  0x1e   :  { %s1093_s13 = scalar_lea.vmem %s1362_s12, 16  ;;  %s1097_s1 = scalar_lea.vmem %s1362_s12, 32 }
  0x1f   :  { %p1094_p11 = scmp.ne.s32.totalorder %s1362_s12, %s1093_s13  ;;  %p1098_p12 = scmp.lt.s32.totalorder %s1362_s12, %s1362_s12 }
  0x20   :  { %p1099_p13 = scmp.lt.s32.totalorder %s1097_s1, %s1093_s13 }
  0x22   :  { %p1100_p0 = por %p1099_p13, %p1098_p12 }
  0x24   :  { %p1101_p1 = pnand %p1100_p0, %p1094_p11 }
  0x26   :  { %1104 = shalt.err (!%p1101_p1)
}
  0x27   :  { %67 = dma.hbm_to_vmem [thread:$0]  %s1589_s3, 16, %s1362_s12, [#allocation9]  }
  0x28   :  { %s1299_s15 = smov [#allocation2]   ;;  %s1300_s17 = smov [#allocation7]  }
  0x29   :  { %s27_s16 = sshll.u32 %s1299_s15, 4  ;;  %s51_s18 = sshll.u32 %s1300_s17, 4  ;;  %s28_s16 = int_to_ptr.vmem [resolvable:$true] %s27_s16  ;;  %s1397_s18 = int_to_ptr.vmem [resolvable:$true] %s51_s18 }
  0x2a   :  { %s1105_s23 = scalar_lea.hbm %s1586_s0, 2048 }
  0x2b   :  { %p1106_p2 = scmp.ne.s32.totalorder %s1586_s0, %s1105_s23  ;;  %p1109_p3 = scmp.lt.u32.totalorder %s1105_s23, %s1586_s0 }
  0x2d   :  { %p1111_p4 = pnand %p1109_p3, %p1106_p2 }
  0x2f   :  { %1114 = shalt.err (!%p1111_p4)
}
  0x30   :  { %s1115_s3 = scalar_lea.vmem %s28_s16, 2048  ;;  %p1120_p6 = scmp.lt.s32.totalorder %s28_s16, %s28_s16 }
  0x31   :  { %p1116_p5 = scmp.ne.s32.totalorder %s28_s16, %s1115_s3  ;;  %p1121_p7 = scmp.lt.s32.totalorder %s1115_s3, %s1115_s3 }
  0x33   :  { %p1122_p8 = por %p1121_p7, %p1120_p6 }
  0x35   :  { %p1123_p9 = pnand %p1122_p8, %p1116_p5 }
  0x37   :  { %1126 = shalt.err (!%p1123_p9)
}
  0x38   :  { %33 = dma.hbm_to_vmem [thread:$0]  %s1586_s0, 2048, %s28_s16, [#allocation3], %s1297_s21, %s1297_s21, %s1298_s22  }
  0x39   :  { %s1127_s11 = scalar_lea.hbm %s1588_s2, 128 }
  0x3a   :  { %p1128_p10 = scmp.ne.s32.totalorder %s1588_s2, %s1127_s11  ;;  %p1131_p11 = scmp.lt.u32.totalorder %s1127_s11, %s1588_s2 }
  0x3c   :  { %p1133_p12 = pnand %p1131_p11, %p1128_p10 }
  0x3e   :  { %1136 = shalt.err (!%p1133_p12)
}
  0x3f   :  { %s1137_s15 = scalar_lea.vmem %s1397_s18, 128  ;;  %p1142_p0 = scmp.lt.s32.totalorder %s1397_s18, %s1397_s18 }
  0x40   :  { %p1138_p13 = scmp.ne.s32.totalorder %s1397_s18, %s1137_s15  ;;  %p1143_p1 = scmp.lt.s32.totalorder %s1137_s15, %s1137_s15 }
  0x42   :  { %p1144_p2 = por %p1143_p1, %p1142_p0 }
  0x44   :  { %p1145_p3 = pnand %p1144_p2, %p1138_p13 }
  0x46   :  { %1148 = shalt.err (!%p1145_p3)
}
  0x47   :  { %s1301_s0 = smov 64   ;;  %s1302_s16 = smov 4  }
  0x48   :  { %57 = dma.hbm_to_vmem [thread:$0]  %s1588_s2, 128, %s1397_s18, [#allocation6], %s1301_s0, %s1301_s0, %s1302_s16  }
  0x49   :  { %s1303_s20 = smov [#allocation10]   ;;  %s1149_s26 = scalar_lea.hbm %s1590_s4, 384 }
  0x4a   :  { %s73_s23 = sshll.u32 %s1303_s20, 4  ;;  %p1150_p4 = scmp.ne.s32.totalorder %s1590_s4, %s1149_s26  ;;  %s74_s23 = int_to_ptr.vmem [resolvable:$true] %s73_s23 }
  0x4b   :  { %p1153_p5 = scmp.lt.u32.totalorder %s1149_s26, %s1590_s4 }
  0x4d   :  { %p1155_p6 = pnand %p1153_p5, %p1150_p4 }
  0x4f   :  { %1158 = shalt.err (!%p1155_p6)
}
  0x50   :  { %s1159_s29 = scalar_lea.vmem %s74_s23, 384  ;;  %p1164_p8 = scmp.lt.s32.totalorder %s74_s23, %s74_s23 }
  0x51   :  { %p1160_p7 = scmp.ne.s32.totalorder %s74_s23, %s1159_s29  ;;  %p1165_p9 = scmp.lt.s32.totalorder %s1159_s29, %s1159_s29 }
  0x53   :  { %p1166_p10 = por %p1165_p9, %p1164_p8 }
  0x55   :  { %p1167_p11 = pnand %p1166_p10, %p1160_p7 }
  0x57   :  { %1170 = shalt.err (!%p1167_p11)
}
  0x58   :  { %s1304_s2 = smov 192   ;;  %s1305_s18 = smov 12  }
  0x59   :  { %79 = dma.hbm_to_vmem [thread:$0]  %s1590_s4, 384, %s74_s23, [#allocation9], %s1304_s2, %s1304_s2, %s1305_s18  }
  0x5a   :  { %s1306_s13 = smov [#allocation11]   ;;  %s1171_s15 = scalar_lea.hbm %s1591_s5, 64 }
  0x5b   :  { %s86_s1 = sshll.u32 %s1306_s13, 4  ;;  %p1172_p12 = scmp.ne.s32.totalorder %s1591_s5, %s1171_s15  ;;  %s87_s1 = int_to_ptr.vmem [resolvable:$true] %s86_s1 }
  0x5c   :  { %p1175_p13 = scmp.lt.u32.totalorder %s1171_s15, %s1591_s5 }
  0x5e   :  { %p1177_p0 = pnand %p1175_p13, %p1172_p12 }
  0x60   :  { %1180 = shalt.err (!%p1177_p0)
}
  0x61   :  { %s1181_s20 = scalar_lea.vmem %s87_s1, 64  ;;  %p1186_p2 = scmp.lt.s32.totalorder %s87_s1, %s87_s1 }
  0x62   :  { %p1182_p1 = scmp.ne.s32.totalorder %s87_s1, %s1181_s20  ;;  %p1187_p3 = scmp.lt.s32.totalorder %s1181_s20, %s1181_s20 }
  0x64   :  { %p1188_p4 = por %p1187_p3, %p1186_p2 }
  0x66   :  { %p1189_p5 = pnand %p1188_p4, %p1182_p1 }
  0x68   :  { %1192 = shalt.err (!%p1189_p5)
}
  0x69   :  { %89 = dma.hbm_to_vmem [thread:$0]  %s1591_s5, 64, %s87_s1, [#allocation12]  }
  0x6a   :  { %1281 = dma.done.wait [#allocation3], 2048  }
  0x6b   :  { %1282 = vsyncadd [#allocation3], 4294965248 }
  0x6c   :  { %1283 = dma.done.wait [#allocation6], 2176  }
  0x6d   :  { %1284 = vsyncadd [#allocation6], 4294965120 }
  0x6e   :  { %1285 = dma.done.wait [#allocation9], 400  }
  0x6f   :  { %1286 = vsyncadd [#allocation9], 4294966896 }
  0x70   :  { %1287 = dma.done.wait [#allocation12], 64  }
  0x71   :  { %1288 = vsyncadd [#allocation12], 4294967232  ;;  %v1056_v0 = vld [vmem:[#allocation7] sm:$0xff]   ;;  %v110_v2 = vld [vmem:[#allocation2 + $0x8] sm:$0xff]  ;;  %vm148_vm0 = vcmask 130048   ;;  %v1307_v28 = vmov 0  }
  0x72   :  { %v109_v1 = vld [vmem:[#allocation2] sm:$0xff]  ;;  %v111_v3 = vld [vmem:[#allocation2 + $0x10] sm:$0xff]  ;;  %975 = vmatprep.subr.bf16.mxu0 %v1056_v0  ;;  %v112_v5 = vld [vmem:[#allocation2 + $0x18] sm:$0xff]  ;;  %1037 = vmatprep.subr.bf16.mxu1 %v1056_v0  ;;  %vm662_vm1 = vcmask 1042432   ;;  %vm613_vm2 = vcmask 23552   ;;  %s1308_s5 = smov [#allocation13]  }
  0x73   :  { %v125_v4 = vpack.c.bf16 %v110_v2, %v109_v1  ;;  %v113_v6 = vld [vmem:[#allocation2 + $0x20] sm:$0xff]  ;;  %v114_v7 = vld [vmem:[#allocation2 + $0x28] sm:$0xff]  ;;  %976 = vmatpush3.bf16.msra.mxu0 %v1056_v0  ;;  %v126_v8 = vpack.c.bf16 %v112_v5, %v111_v3  ;;  %1038 = vmatpush3.bf16.msra.mxu1 %v1056_v0  ;;  %v119_v12 = vld [vmem:[#allocation2 + $0x50] sm:$0xff]  ;;  %s832_s24 = sshll.u32 %s1308_s5, 4  ;;  %s1309_s25 = smov [#allocation14]   ;;  %s833_s24 = int_to_ptr.vmem [resolvable:$true] %s832_s24 }
  0x74   :  { %v127_v9 = vpack.c.bf16 %v114_v7, %v113_v6  ;;  %v117_v10 = vld [vmem:[#allocation2 + $0x40] sm:$0xff]  ;;  %v118_v11 = vld [vmem:[#allocation2 + $0x48] sm:$0xff]  ;;  %v120_v13 = vld [vmem:[#allocation2 + $0x58] sm:$0xff]  ;;  %s844_s26 = sshll.u32 %s1309_s25, 4  ;;  %s1310_s27 = smov [#allocation16]   ;;  %s1505_s26 = int_to_ptr.vmem [resolvable:$true] %s844_s26 }
  0x75   :  { %977 = vmatprep.mubr.msk.bf16.mxu0 %vm148_vm0, %v125_v4  ;;  %v115_v14 = vld [vmem:[#allocation2 + $0x30] sm:$0xff]  ;;  %v129_v15 = vpack.c.bf16 %v118_v11, %v117_v10  ;;  %v130_v16 = vpack.c.bf16 %v120_v13, %v119_v12  ;;  %v121_v17 = vld [vmem:[#allocation2 + $0x60] sm:$0xff]  ;;  %v122_v18 = vld [vmem:[#allocation2 + $0x68] sm:$0xff]  ;;  %s856_s3 = sshll.u32 %s1310_s27, 4  ;;  %s1311_s12 = smov [#allocation17]   ;;  %s1507_s3 = int_to_ptr.vmem [resolvable:$true] %s856_s3 }
  0x76   :  { %978 = vmatmul.mubr.msk.bf16.vlgmr.msra.gmra.mrb[0].mxu0 %vm148_vm0, %v126_v8  ;;  %v116_v19 = vld [vmem:[#allocation2 + $0x38] sm:$0xff]  ;;  %v131_v20 = vpack.c.bf16 %v122_v18, %v121_v17  ;;  %v123_v24 = vld [vmem:[#allocation2 + $0x70] sm:$0xff]  ;;  %v612_v29 = vld [vmem:[#allocation11] sm:$0x7]  ;;  %s868_s28 = sshll.u32 %s1311_s12, 4  ;;  %s1193_s29 = scalar_lea.vmem %s833_s24, 2048  ;;  %s1509_s28 = int_to_ptr.vmem [resolvable:$true] %s868_s28 }
  0x77   :  { %981 = vmatprep.mubr.msk.bf16.mxu0 %vm148_vm0, %v127_v9  ;;  %985 = vmatprep.mubr.msk.bf16.mxu1 %vm148_vm0, %v129_v15  ;;  %v1057_v21 = vld [vmem:[#allocation10 + $0x8] ss:$12 sps:$4 sm:$0xff]   ;;  %v1058_v22 = vld [vmem:[#allocation10] ss:$12 sps:$4 sm:$0xff]   ;;  %v1060_v23 = vld [vmem:[#allocation10 + $0x4] ss:$12 sps:$4 sm:$0xff]   ;;  %v128_v26 = vpack.c.bf16 %v116_v19, %v115_v14  ;;  %p1194_p6 = scmp.ne.s32.totalorder %s833_s24, %s1193_s29  ;;  %p1198_p7 = scmp.lt.s32.totalorder %s833_s24, %s833_s24 }
  0x78   :  { %986 = vmatmul.mubr.msk.bf16.vlgmr.msra.gmra.mrb[0].mxu1 %vm148_vm0, %v130_v16  ;;  %v124_v25 = vld [vmem:[#allocation2 + $0x78] sm:$0xff]  ;;  %993 = vmatprep.subr.bf16.mxu0 %v1057_v21  ;;  %v894_v30 = vld [vmem:[#allocation8] ss:$0 sm:$0xff]  ;;  %p1199_p8 = scmp.lt.s32.totalorder %s1193_s29, %s1193_s29 }
  0x79   :  { %989 = vmatprep.mubr.msk.bf16.mxu1 %vm148_vm0, %v131_v20  ;;  %338 = vmatprep.subr.bf16.mxu1 %v1060_v23  ;;  %v132_v27 = vpack.c.bf16 %v124_v25, %v123_v24  ;;  %v596_v23 = vld [vmem:[#allocation5] sm:$0xff]  ;;  %v597_v24 = vld [vmem:[#allocation5 + $0x8] sm:$0xff]  ;;  %v598_v25 = vld [vmem:[#allocation5 + $0x10] sm:$0xff] }
  0x7a   :  { %994 = vmatpush3.bf16.msra.mxu0 %v1057_v21  ;;  %339 = vmatpush1.bf16.msra.mxu1 %v1058_v22  ;;  %p1200_p9 = por %p1199_p8, %p1198_p7 }
  0x7b   :  { %1011 = vmatprep.subr.msk.mxu0 %vm662_vm1, %v612_v29 }
  0x7c   :  { %p1201_p10 = pnand %p1200_p9, %p1194_p6 }
  0x7e   :  { %982 = vmatmul.mubr.msk.bf16.gmra.mrb[4].mxu0 %vm148_vm0, %v128_v26  ;;  %v599_v26 = vld [vmem:[#allocation5 + $0x18] sm:$0xff] }
  0x80   :  { %990 = vmatmul.mubr.msk.bf16.gmra.mrb[4].mxu1 %vm148_vm0, %v132_v27  ;;  %v600_v27 = vld [vmem:[#allocation5 + $0x20] sm:$0xff] }
  0x81   :  { %370 = vmatprep.mubr.bf16.mxu1 %v1307_v28 }
 0x149   :  { %v979_v31 = vpop.f32.mrb[0].mxu0 }
 0x14a   :  { %v216_v32 = vadd.f32 %v979_v31, %v894_v30  ;;  %v207_v33 = vpop.f32.mrb[1].mxu0  ;;  %v603_v31 = vld [vmem:[#allocation5 + $0x38] sm:$0xff] }
 0x14b   :  { %v208_v34 = vadd.f32 %v894_v30, %v207_v33  ;;  %v980_v35 = vpop.f32.mrb[2].mxu0  ;;  %v987_v36 = vpop.f32.mrb[0].mxu1  ;;  %v605_v33 = vld [vmem:[#allocation5 + $0x48] sm:$0xff] }
 0x14c   :  { %v219_v37 = vadd.f32 %v980_v35, %v894_v30  ;;  %v210_v38 = vpop.f32.mrb[3].mxu0  ;;  %v248_v39 = vadd.f32 %v987_v36, %v894_v30  ;;  %v239_v40 = vpop.f32.mrb[1].mxu1  ;;  %v272_v44 = vmax.f32 %v216_v32, 0.0  ;;  %v604_v32 = vld [vmem:[#allocation5 + $0x40] sm:$0xff]  ;;  %v607_v35 = vld [vmem:[#allocation5 + $0x58] sm:$0xff] }
 0x14d   :  { %v211_v41 = vadd.f32 %v894_v30, %v210_v38  ;;  %v240_v42 = vadd.f32 %v894_v30, %v239_v40  ;;  %v988_v43 = vpop.f32.mrb[2].mxu1  ;;  %v270_v49 = vmax.f32 %v208_v34, 0.0  ;;  %v606_v34 = vld [vmem:[#allocation5 + $0x50] sm:$0xff]  ;;  %v608_v36 = vld [vmem:[#allocation5 + $0x60] sm:$0xff] }
 0x14e   :  { %v273_v45 = vmax.f32 %v219_v37, 0.0  ;;  %v280_v46 = vmax.f32 %v248_v39, 0.0  ;;  %v251_v47 = vadd.f32 %v988_v43, %v894_v30  ;;  %v242_v48 = vpop.f32.mrb[3].mxu1  ;;  %v609_v37 = vld [vmem:[#allocation5 + $0x68] sm:$0xff]  ;;  %v610_v38 = vld [vmem:[#allocation5 + $0x70] sm:$0xff]  ;;  %v611_v39 = vld [vmem:[#allocation5 + $0x78] sm:$0xff] }
 0x14f   :  { %v271_v50 = vmax.f32 %v211_v41, 0.0  ;;  %v278_v51 = vmax.f32 %v240_v42, 0.0  ;;  %v243_v52 = vadd.f32 %v894_v30, %v242_v48 }
 0x150   :  { %v287_v53 = vpack.c.bf16 %v273_v45, %v272_v44  ;;  %v281_v54 = vmax.f32 %v251_v47, 0.0 }
 0x151   :  { %v286_v55 = vpack.c.bf16 %v271_v50, %v270_v49  ;;  %v983_v56 = vpop.f32.mrb[4].mxu0  ;;  %v279_v57 = vmax.f32 %v243_v52, 0.0 }
 0x152   :  { %v232_v58 = vadd.f32 %v983_v56, %v894_v30  ;;  %v223_v59 = vpop.f32.mrb[5].mxu0  ;;  %v291_v60 = vpack.c.bf16 %v281_v54, %v280_v46 }
 0x153   :  { %v224_v61 = vadd.f32 %v894_v30, %v223_v59  ;;  %v984_v62 = vpop.f32.mrb[6].mxu0  ;;  %907 = vmatmul.mubr.msk.bf16.vlgmr.msra.gmra.mrb[8].mxu1 %vm148_vm0, %v286_v55  ;;  %995 = vmatprep.mubr.msk.bf16.mxu0 %vm148_vm0, %v286_v55  ;;  %v290_v63 = vpack.c.bf16 %v279_v57, %v278_v51  ;;  %v991_v0 = vpop.f32.mrb[4].mxu1 }
 0x154   :  { %v235_v1 = vadd.f32 %v984_v62, %v894_v30  ;;  %v226_v2 = vpop.f32.mrb[7].mxu0  ;;  %996 = vmatmul.mubr.msk.bf16.vlgmr.msra.gmra.mrb[8].mxu0 %vm148_vm0, %v287_v53  ;;  %380 = vmatprep.mubr.bf16.mxu1 %v1307_v28  ;;  %v264_v3 = vadd.f32 %v991_v0, %v894_v30  ;;  %v255_v4 = vpop.f32.mrb[5].mxu1  ;;  %v276_v8 = vmax.f32 %v232_v58, 0.0 }
 0x155   :  { %v227_v5 = vadd.f32 %v894_v30, %v226_v2  ;;  %1012 = vmatpush3.msk.msra.mxu0 %vm662_vm1, %v612_v29  ;;  %v256_v6 = vadd.f32 %v894_v30, %v255_v4  ;;  %v992_v7 = vpop.f32.mrb[6].mxu1  ;;  %v274_v13 = vmax.f32 %v224_v61, 0.0  ;;  %v601_v29 = vld [vmem:[#allocation5 + $0x28] sm:$0xff] }
 0x156   :  { %v277_v9 = vmax.f32 %v235_v1, 0.0  ;;  %v284_v10 = vmax.f32 %v264_v3, 0.0  ;;  %v267_v11 = vadd.f32 %v992_v7, %v894_v30  ;;  %v258_v12 = vpop.f32.mrb[7].mxu1 }
 0x157   :  { %v275_v14 = vmax.f32 %v227_v5, 0.0  ;;  %v282_v15 = vmax.f32 %v256_v6, 0.0  ;;  %v259_v16 = vadd.f32 %v894_v30, %v258_v12  ;;  %v602_v30 = vld [vmem:[#allocation5 + $0x30] sm:$0xff] }
 0x158   :  { %v289_v17 = vpack.c.bf16 %v277_v9, %v276_v8  ;;  %v285_v18 = vmax.f32 %v267_v11, 0.0 }
 0x159   :  { %v288_v19 = vpack.c.bf16 %v275_v14, %v274_v13  ;;  %v283_v20 = vmax.f32 %v259_v16, 0.0 }
 0x15a   :  { %v293_v21 = vpack.c.bf16 %v285_v18, %v284_v10 }
 0x15b   :  { %908 = vmatmul.mubr.msk.bf16.gmra.mrb[12].mxu1 %vm148_vm0, %v287_v53  ;;  %999 = vmatprep.mubr.msk.bf16.mxu0 %vm148_vm0, %v288_v19  ;;  %v292_v22 = vpack.c.bf16 %v283_v20, %v282_v15 }
 0x15c   :  { %1000 = vmatmul.mubr.msk.bf16.gmra.mrb[12].mxu0 %vm148_vm0, %v289_v17  ;;  %390 = vmatprep.mubr.bf16.mxu1 %v1307_v28 }
 0x15d   :  { %1003 = vmatprep.mubr.msk.bf16.mxu0 %vm148_vm0, %v290_v63 }
 0x163   :  { %909 = vmatmul.mubr.msk.bf16.gmra.mrb[16].mxu1 %vm148_vm0, %v288_v19 }
 0x164   :  { %1004 = vmatmul.mubr.msk.bf16.gmra.mrb[16].mxu0 %vm148_vm0, %v291_v60  ;;  %400 = vmatprep.mubr.bf16.mxu1 %v1307_v28 }
 0x165   :  { %1007 = vmatprep.mubr.msk.bf16.mxu0 %vm148_vm0, %v292_v22 }
 0x16b   :  { %910 = vmatmul.mubr.msk.bf16.gmra.mrb[20].mxu1 %vm148_vm0, %v289_v17 }
 0x16c   :  { %1008 = vmatmul.mubr.msk.bf16.gmra.mrb[20].mxu0 %vm148_vm0, %v293_v21  ;;  %410 = vmatprep.mubr.bf16.mxu1 %v1307_v28 }
 0x16d   :  { %1013 = vmatprep.mubr.msk.f32.mxu0 %vm613_vm2, %v596_v23 }
 0x173   :  { %911 = vmatmul.mubr.msk.bf16.gmra.mrb[24].mxu1 %vm148_vm0, %v290_v63 }
 0x174   :  { %1014 = vmatmul.mubr.msk.f32.vlgmr.msra.gmra.mrb[24].mxu0 %vm613_vm2, %v597_v24  ;;  %420 = vmatprep.mubr.bf16.mxu1 %v1307_v28 }
 0x175   :  { %1016 = vmatprep.mubr.msk.f32.mxu0 %vm613_vm2, %v598_v25 }
 0x178   :  { %1017 = vmatmul.mubr.msk.f32.gmra.mrb[26].mxu0 %vm613_vm2, %v599_v26 }
 0x179   :  { %1019 = vmatprep.mubr.msk.f32.mxu0 %vm613_vm2, %v600_v27 }
 0x17b   :  { %912 = vmatmul.mubr.msk.bf16.gmra.mrb[28].mxu1 %vm148_vm0, %v291_v60 }
 0x17c   :  { %1020 = vmatmul.mubr.msk.f32.gmra.mrb[28].mxu0 %vm613_vm2, %v601_v29  ;;  %430 = vmatprep.mubr.bf16.mxu1 %v1307_v28 }
 0x17d   :  { %1022 = vmatprep.mubr.msk.f32.mxu0 %vm613_vm2, %v602_v30 }
 0x180   :  { %1023 = vmatmul.mubr.msk.f32.gmra.mrb[30].mxu0 %vm613_vm2, %v603_v31 }
 0x181   :  { %1025 = vmatprep.mubr.msk.f32.mxu0 %vm613_vm2, %v604_v32 }
 0x183   :  { %913 = vmatmul.mubr.msk.bf16.gmra.mrb[32].mxu1 %vm148_vm0, %v292_v22 }
 0x184   :  { %1026 = vmatmul.mubr.msk.f32.gmra.mrb[32].mxu0 %vm613_vm2, %v605_v33  ;;  %440 = vmatprep.mubr.bf16.mxu1 %v1307_v28 }
 0x185   :  { %1028 = vmatprep.mubr.msk.f32.mxu0 %vm613_vm2, %v606_v34 }
 0x188   :  { %1029 = vmatmul.mubr.msk.f32.gmra.mrb[34].mxu0 %vm613_vm2, %v607_v35 }
 0x189   :  { %1031 = vmatprep.mubr.msk.f32.mxu0 %vm613_vm2, %v608_v36 }
 0x18b   :  { %914 = vmatmul.mubr.msk.bf16.gmra.mrb[36].mxu1 %vm148_vm0, %v293_v21 }
 0x18c   :  { %1032 = vmatmul.mubr.msk.f32.gmra.mrb[36].mxu0 %vm613_vm2, %v609_v37 }
 0x18d   :  { %1034 = vmatprep.mubr.msk.f32.mxu0 %vm613_vm2, %v610_v38 }
 0x190   :  { %1035 = vmatmul.mubr.msk.f32.gmra.mrb[38].mxu0 %vm613_vm2, %v611_v39 }
 0x226   :  { %v372_v28 = vpop.f32.mrb[8].mxu1 }
 0x227   :  { %548 = vst [vmem:[#allocation13] sm:$0xff] %v372_v28  ;;  %v374_v40 = vpop.f32.mrb[9].mxu1  ;;  %v997_v41 = vpop.f32.mrb[8].mxu0 }
 0x228   :  { %564 = vst [vmem:[#allocation14] sm:$0xff] %v374_v40  ;;  %582 = vst [vmem:[#allocation16 + $0x10] sm:$0xff] %v997_v41  ;;  %v376_v42 = vpop.f32.mrb[10].mxu1  ;;  %v485_v43 = vpop.f32.mrb[9].mxu0 }
 0x229   :  { %549 = vst [vmem:[#allocation13 + $0x8] sm:$0xff] %v376_v42  ;;  %580 = vst [vmem:[#allocation16] sm:$0xff] %v485_v43  ;;  %v378_v44 = vpop.f32.mrb[11].mxu1  ;;  %v998_v45 = vpop.f32.mrb[10].mxu0 }
 0x22a   :  { %565 = vst [vmem:[#allocation14 + $0x8] sm:$0xff] %v378_v44  ;;  %583 = vst [vmem:[#allocation16 + $0x18] sm:$0xff] %v998_v45  ;;  %v488_v46 = vpop.f32.mrb[11].mxu0 }
 0x22b   :  { %581 = vst [vmem:[#allocation16 + $0x8] sm:$0xff] %v488_v46 }
 0x22e   :  { %v382_v47 = vpop.f32.mrb[12].mxu1 }
 0x22f   :  { %550 = vst [vmem:[#allocation13 + $0x10] sm:$0xff] %v382_v47  ;;  %v384_v48 = vpop.f32.mrb[13].mxu1  ;;  %v1001_v49 = vpop.f32.mrb[12].mxu0 }
 0x230   :  { %566 = vst [vmem:[#allocation14 + $0x10] sm:$0xff] %v384_v48  ;;  %586 = vst [vmem:[#allocation16 + $0x30] sm:$0xff] %v1001_v49  ;;  %v386_v50 = vpop.f32.mrb[14].mxu1  ;;  %v501_v51 = vpop.f32.mrb[13].mxu0 }
 0x231   :  { %551 = vst [vmem:[#allocation13 + $0x18] sm:$0xff] %v386_v50  ;;  %584 = vst [vmem:[#allocation16 + $0x20] sm:$0xff] %v501_v51  ;;  %v388_v52 = vpop.f32.mrb[15].mxu1  ;;  %v1002_v53 = vpop.f32.mrb[14].mxu0 }
 0x232   :  { %567 = vst [vmem:[#allocation14 + $0x18] sm:$0xff] %v388_v52  ;;  %587 = vst [vmem:[#allocation16 + $0x38] sm:$0xff] %v1002_v53  ;;  %v504_v54 = vpop.f32.mrb[15].mxu0 }
 0x233   :  { %585 = vst [vmem:[#allocation16 + $0x28] sm:$0xff] %v504_v54 }
 0x236   :  { %v392_v55 = vpop.f32.mrb[16].mxu1 }
 0x237   :  { %552 = vst [vmem:[#allocation13 + $0x20] sm:$0xff] %v392_v55  ;;  %v394_v56 = vpop.f32.mrb[17].mxu1  ;;  %v1005_v57 = vpop.f32.mrb[16].mxu0 }
 0x238   :  { %568 = vst [vmem:[#allocation14 + $0x20] sm:$0xff] %v394_v56  ;;  %590 = vst [vmem:[#allocation16 + $0x50] sm:$0xff] %v1005_v57  ;;  %v396_v58 = vpop.f32.mrb[18].mxu1  ;;  %v517_v59 = vpop.f32.mrb[17].mxu0 }
 0x239   :  { %553 = vst [vmem:[#allocation13 + $0x28] sm:$0xff] %v396_v58  ;;  %588 = vst [vmem:[#allocation16 + $0x40] sm:$0xff] %v517_v59  ;;  %v398_v60 = vpop.f32.mrb[19].mxu1  ;;  %v1006_v61 = vpop.f32.mrb[18].mxu0 }
 0x23a   :  { %569 = vst [vmem:[#allocation14 + $0x28] sm:$0xff] %v398_v60  ;;  %591 = vst [vmem:[#allocation16 + $0x58] sm:$0xff] %v1006_v61  ;;  %v520_v62 = vpop.f32.mrb[19].mxu0 }
 0x23b   :  { %589 = vst [vmem:[#allocation16 + $0x48] sm:$0xff] %v520_v62 }
 0x23e   :  { %v402_v63 = vpop.f32.mrb[20].mxu1 }
 0x23f   :  { %554 = vst [vmem:[#allocation13 + $0x30] sm:$0xff] %v402_v63  ;;  %v404_v0 = vpop.f32.mrb[21].mxu1  ;;  %v1009_v1 = vpop.f32.mrb[20].mxu0 }
 0x240   :  { %570 = vst [vmem:[#allocation14 + $0x30] sm:$0xff] %v404_v0  ;;  %594 = vst [vmem:[#allocation16 + $0x70] sm:$0xff] %v1009_v1  ;;  %v406_v2 = vpop.f32.mrb[22].mxu1  ;;  %v533_v3 = vpop.f32.mrb[21].mxu0 }
 0x241   :  { %555 = vst [vmem:[#allocation13 + $0x38] sm:$0xff] %v406_v2  ;;  %592 = vst [vmem:[#allocation16 + $0x60] sm:$0xff] %v533_v3  ;;  %v408_v4 = vpop.f32.mrb[23].mxu1  ;;  %v1010_v5 = vpop.f32.mrb[22].mxu0 }
 0x242   :  { %571 = vst [vmem:[#allocation14 + $0x38] sm:$0xff] %v408_v4  ;;  %595 = vst [vmem:[#allocation16 + $0x78] sm:$0xff] %v1010_v5  ;;  %v536_v6 = vpop.f32.mrb[23].mxu0 }
 0x243   :  { %593 = vst [vmem:[#allocation16 + $0x68] sm:$0xff] %v536_v6 }
 0x246   :  { %v412_v7 = vpop.f32.mrb[24].mxu1 }
 0x247   :  { %556 = vst [vmem:[#allocation13 + $0x40] sm:$0xff] %v412_v7  ;;  %v414_v8 = vpop.f32.mrb[25].mxu1  ;;  %v1015_v9 = vpop.f32.mrb[24].mxu0 }
 0x248   :  { %572 = vst [vmem:[#allocation14 + $0x40] sm:$0xff] %v414_v8  ;;  %812 = vst [vmem:[#allocation17 + $0x8] sm:$0xff] %v1015_v9  ;;  %v416_v10 = vpop.f32.mrb[26].mxu1  ;;  %v732_v11 = vpop.f32.mrb[25].mxu0 }
 0x249   :  { %557 = vst [vmem:[#allocation13 + $0x48] sm:$0xff] %v416_v10  ;;  %811 = vst [vmem:[#allocation17] sm:$0xff] %v732_v11  ;;  %v418_v12 = vpop.f32.mrb[27].mxu1 }
 0x24a   :  { %573 = vst [vmem:[#allocation14 + $0x48] sm:$0xff] %v418_v12 }
 0x24b   :  { %v1018_v13 = vpop.f32.mrb[26].mxu0 }
 0x24c   :  { %814 = vst [vmem:[#allocation17 + $0x18] sm:$0xff] %v1018_v13  ;;  %v742_v14 = vpop.f32.mrb[27].mxu0 }
 0x24d   :  { %813 = vst [vmem:[#allocation17 + $0x10] sm:$0xff] %v742_v14 }
 0x24e   :  { %v422_v15 = vpop.f32.mrb[28].mxu1 }
 0x24f   :  { %558 = vst [vmem:[#allocation13 + $0x50] sm:$0xff] %v422_v15  ;;  %v424_v16 = vpop.f32.mrb[29].mxu1  ;;  %v1021_v17 = vpop.f32.mrb[28].mxu0 }
 0x250   :  { %574 = vst [vmem:[#allocation14 + $0x50] sm:$0xff] %v424_v16  ;;  %816 = vst [vmem:[#allocation17 + $0x28] sm:$0xff] %v1021_v17  ;;  %v426_v18 = vpop.f32.mrb[30].mxu1  ;;  %v752_v19 = vpop.f32.mrb[29].mxu0 }
 0x251   :  { %559 = vst [vmem:[#allocation13 + $0x58] sm:$0xff] %v426_v18  ;;  %815 = vst [vmem:[#allocation17 + $0x20] sm:$0xff] %v752_v19  ;;  %v428_v20 = vpop.f32.mrb[31].mxu1 }
 0x252   :  { %575 = vst [vmem:[#allocation14 + $0x58] sm:$0xff] %v428_v20 }
 0x253   :  { %v1024_v21 = vpop.f32.mrb[30].mxu0 }
 0x254   :  { %818 = vst [vmem:[#allocation17 + $0x38] sm:$0xff] %v1024_v21  ;;  %v762_v22 = vpop.f32.mrb[31].mxu0 }
 0x255   :  { %817 = vst [vmem:[#allocation17 + $0x30] sm:$0xff] %v762_v22 }
 0x256   :  { %v432_v23 = vpop.f32.mrb[32].mxu1 }
 0x257   :  { %560 = vst [vmem:[#allocation13 + $0x60] sm:$0xff] %v432_v23  ;;  %v434_v24 = vpop.f32.mrb[33].mxu1  ;;  %v1027_v25 = vpop.f32.mrb[32].mxu0 }
 0x258   :  { %576 = vst [vmem:[#allocation14 + $0x60] sm:$0xff] %v434_v24  ;;  %820 = vst [vmem:[#allocation17 + $0x48] sm:$0xff] %v1027_v25  ;;  %v436_v26 = vpop.f32.mrb[34].mxu1  ;;  %v772_v27 = vpop.f32.mrb[33].mxu0 }
 0x259   :  { %561 = vst [vmem:[#allocation13 + $0x68] sm:$0xff] %v436_v26  ;;  %819 = vst [vmem:[#allocation17 + $0x40] sm:$0xff] %v772_v27  ;;  %v438_v29 = vpop.f32.mrb[35].mxu1 }
 0x25a   :  { %577 = vst [vmem:[#allocation14 + $0x68] sm:$0xff] %v438_v29 }
 0x25b   :  { %v1030_v30 = vpop.f32.mrb[34].mxu0 }
 0x25c   :  { %822 = vst [vmem:[#allocation17 + $0x58] sm:$0xff] %v1030_v30  ;;  %v782_v31 = vpop.f32.mrb[35].mxu0 }
 0x25d   :  { %821 = vst [vmem:[#allocation17 + $0x50] sm:$0xff] %v782_v31 }
 0x25e   :  { %v442_v32 = vpop.f32.mrb[36].mxu1 }
 0x25f   :  { %562 = vst [vmem:[#allocation13 + $0x70] sm:$0xff] %v442_v32  ;;  %v444_v33 = vpop.f32.mrb[37].mxu1  ;;  %v1033_v34 = vpop.f32.mrb[36].mxu0 }
 0x260   :  { %578 = vst [vmem:[#allocation14 + $0x70] sm:$0xff] %v444_v33  ;;  %824 = vst [vmem:[#allocation17 + $0x68] sm:$0xff] %v1033_v34  ;;  %v446_v35 = vpop.f32.mrb[38].mxu1  ;;  %v792_v36 = vpop.f32.mrb[37].mxu0 }
 0x261   :  { %563 = vst [vmem:[#allocation13 + $0x78] sm:$0xff] %v446_v35  ;;  %823 = vst [vmem:[#allocation17 + $0x60] sm:$0xff] %v792_v36  ;;  %v448_v37 = vpop.f32.mrb[39].mxu1 }
 0x262   :  { %579 = vst [vmem:[#allocation14 + $0x78] sm:$0xff] %v448_v37 }
 0x263   :  { %1204 = shalt.err (!%p1201_p10)
}
 0x264   :  { %s1205_s30 = scalar_lea.hbm %s1592_s6, 2048 }
 0x265   :  { %p1206_p11 = scmp.ne.s32.totalorder %s1592_s6, %s1205_s30  ;;  %p1209_p12 = scmp.lt.u32.totalorder %s1205_s30, %s1592_s6 }
 0x267   :  { %p1211_p13 = pnand %p1209_p12, %p1206_p11 }
 0x269   :  { %1214 = shalt.err (!%p1211_p13)
}
 0x26a   :  { %838 = dma.vmem_to_hbm [thread:$0]  %s833_s24, 2048, %s1592_s6, [#allocation4], %s1297_s21, %s1297_s21, %s1298_s22   ;;  %v1036_v38 = vpop.f32.mrb[38].mxu0 }
 0x26b   :  { %s1215_s0 = scalar_lea.vmem %s1505_s26, 2048  ;;  %p1220_p1 = scmp.lt.s32.totalorder %s1505_s26, %s1505_s26 }
 0x26c   :  { %p1216_p0 = scmp.ne.s32.totalorder %s1505_s26, %s1215_s0  ;;  %p1221_p2 = scmp.lt.s32.totalorder %s1215_s0, %s1215_s0 }
 0x26e   :  { %p1222_p3 = por %p1221_p2, %p1220_p1 }
 0x270   :  { %p1223_p4 = pnand %p1222_p3, %p1216_p0 }
 0x272   :  { %1226 = shalt.err (!%p1223_p4)
}
 0x273   :  { %s1227_s19 = scalar_lea.hbm %s1593_s7, 2048 }
 0x274   :  { %p1228_p5 = scmp.ne.s32.totalorder %s1593_s7, %s1227_s19  ;;  %p1231_p6 = scmp.lt.u32.totalorder %s1227_s19, %s1593_s7 }
 0x276   :  { %p1233_p7 = pnand %p1231_p6, %p1228_p5 }
 0x278   :  { %1236 = shalt.err (!%p1233_p7)
}
 0x279   :  { %850 = dma.vmem_to_hbm [thread:$0]  %s1505_s26, 2048, %s1593_s7, [#allocation15], %s1297_s21, %s1297_s21, %s1298_s22   ;;  %826 = vst [vmem:[#allocation17 + $0x78] sm:$0xff] %v1036_v38  ;;  %v802_v39 = vpop.f32.mrb[39].mxu0 }
 0x27a   :  { %s1237_s25 = scalar_lea.vmem %s1507_s3, 2048  ;;  %p1242_p9 = scmp.lt.s32.totalorder %s1507_s3, %s1507_s3 }
 0x27b   :  { %p1238_p8 = scmp.ne.s32.totalorder %s1507_s3, %s1237_s25  ;;  %p1243_p10 = scmp.lt.s32.totalorder %s1237_s25, %s1237_s25 }
 0x27d   :  { %p1244_p11 = por %p1243_p10, %p1242_p9 }
 0x27f   :  { %p1245_p12 = pnand %p1244_p11, %p1238_p8 }
 0x281   :  { %1248 = shalt.err (!%p1245_p12)
}
 0x282   :  { %s1249_s29 = scalar_lea.hbm %s1594_s8, 2048 }
 0x283   :  { %p1250_p13 = scmp.ne.s32.totalorder %s1594_s8, %s1249_s29  ;;  %p1253_p0 = scmp.lt.u32.totalorder %s1249_s29, %s1594_s8 }
 0x285   :  { %p1255_p1 = pnand %p1253_p0, %p1250_p13 }
 0x287   :  { %1258 = shalt.err (!%p1255_p1)
}
 0x288   :  { %862 = dma.vmem_to_hbm [thread:$0]  %s1507_s3, 2048, %s1594_s8, [#allocation15], %s1297_s21, %s1297_s21, %s1298_s22   ;;  %825 = vst [vmem:[#allocation17 + $0x70] sm:$0xff] %v802_v39 }
 0x289   :  { %s1259_s13 = scalar_lea.vmem %s1509_s28, 2048  ;;  %p1264_p3 = scmp.lt.s32.totalorder %s1509_s28, %s1509_s28 }
 0x28a   :  { %p1260_p2 = scmp.ne.s32.totalorder %s1509_s28, %s1259_s13  ;;  %p1265_p4 = scmp.lt.s32.totalorder %s1259_s13, %s1259_s13 }
 0x28c   :  { %p1266_p5 = por %p1265_p4, %p1264_p3 }
 0x28e   :  { %p1267_p6 = pnand %p1266_p5, %p1260_p2 }
 0x290   :  { %1270 = shalt.err (!%p1267_p6)
}
 0x291   :  { %s1271_s14 = scalar_lea.hbm %s1595_s9, 2048 }
 0x292   :  { %p1272_p7 = scmp.ne.s32.totalorder %s1595_s9, %s1271_s14  ;;  %p1275_p8 = scmp.lt.u32.totalorder %s1271_s14, %s1595_s9 }
 0x294   :  { %p1277_p9 = pnand %p1275_p8, %p1272_p7 }
 0x296   :  { %1280 = shalt.err (!%p1277_p9)
}
 0x297   :  { %874 = dma.vmem_to_hbm [thread:$0]  %s1509_s28, 2048, %s1595_s9, [#allocation18], %s1297_s21, %s1297_s21, %s1298_s22  }
 0x298   :  { %1289 = dma.done.wait [#allocation4], 2048  }
 0x299   :  { %1290 = vsyncadd [#allocation4], 4294965248 }
 0x29a   :  { %1291 = dma.done.wait [#allocation15], 4096  }
 0x29b   :  { %1292 = vsyncadd [#allocation15], 4294963200 }
 0x29c   :  { %1293 = dma.done.wait [#allocation18], 2048  }
 0x29d   :  { %1294 = vsyncadd [#allocation18], 4294965248 }
 0x29e   :  { %887 = vsyncpa [#allocation3], 1 }
 0x29f   :  { %888 = vsyncpa [#allocation6], 1 }
 0x2a0   :  { %889 = vsyncpa [#allocation9], 1 }
 0x2a1   :  { %890 = vsyncpa [#allocation12], 1 }
 0x2a2   :  { %891 = vsyncpa [#allocation4], 1 }
 0x2a3   :  { %892 = vsyncpa [#allocation15], 1 }
 0x2a4   :  { %893 = vsyncpa [#allocation18], 1 }

</bundles_post_ra>
